<compile_context>
chip_gen: v6e
topology: v6e:2x2x1
jax: 0.10.0
libtpu: 0.0.40
codegen_flags: <defaults>
</compile_context>

<pallas_src>
import functools

import numpy as np
import jax
import jax.numpy as jnp
from jax import lax
from jax.experimental import pallas as pl
from jax.experimental.pallas import tpu as pltpu


# ------------------------------ Pallas kernel -------------------------------

def _fused_deconv_gn_relu_kernel(x_ref, b_ref, mj_ref, mi_ref, gam_ref, bet_ref,
                                 o_ref, acc_ref, *, cout, groups, eps, width):
    """Fused per-sample: 4-phase transposed conv + GroupNorm + ReLU.

    x_ref:   (1, Cin, HW)      f32 input, lane-dense over HW
    b_ref:   (4, 4*Cout, Cin)  bf16 phase/group-packed deconv weights (per tap)
    mj_ref:  (1, HW)           f32 {0,1} mask: j+1 tap valid
    mi_ref:  (1, HW)           f32 {0,1} mask: i+1 tap valid
    gam_ref: (4*Cout, 1)       f32 gamma expanded to group-major rows
    bet_ref: (4*Cout, 1)       f32 beta  expanded to group-major rows
    o_ref:   (1, 4*Cout, HW)   f32 packed output (rows = [group][phase][chan])
    acc_ref: (4*Cout, HW)      f32 VMEM scratch for the conv result
    """
    hw = x_ref.shape[-1]
    x = x_ref[0]                                    # (Cin, HW) f32
    mj = mj_ref[...]                                # (1, HW)
    mi = mi_ref[...]                                # (1, HW)

    # Shifted taps, built in VMEM with lane rotations + boundary masks:
    #   t1[k] = x[k+1]    (x[i, j+1]),   zero where j == W-1
    #   t2[k] = x[k+W]    (x[i+1, j]),   zero where i == H-1
    #   t3[k] = x[k+W+1]  (x[i+1, j+1]), zero at either boundary
    t1 = pltpu.roll(x, hw - 1, axis=1) * mj
    t2 = pltpu.roll(x, hw - width, axis=1) * mi
    t3 = pltpu.roll(x, hw - width - 1, axis=1) * (mj * mi)

    bf = jnp.bfloat16
    conv = (jnp.dot(b_ref[0], x.astype(bf), preferred_element_type=jnp.float32)
            + jnp.dot(b_ref[1], t1.astype(bf), preferred_element_type=jnp.float32)
            + jnp.dot(b_ref[2], t2.astype(bf), preferred_element_type=jnp.float32)
            + jnp.dot(b_ref[3], t3.astype(bf), preferred_element_type=jnp.float32))
    acc_ref[...] = conv                             # stage in VMEM scratch

    # Single-pass, vectorized GroupNorm statistics (one lane-axis reduce pass).
    srow = jnp.sum(conv, axis=-1, keepdims=True)            # (4*Cout, 1)
    ssrow = jnp.sum(conv * conv, axis=-1, keepdims=True)    # (4*Cout, 1)

    cs = cout // groups
    rows = 4 * cs                                   # contiguous rows per group
    count = float(rows * hw)                        # == cs * (2H) * (2W)
    # Small static unroll over groups (G = Cout // 8); only scalar folding and
    # one contiguous FMA+ReLU store per group.
    for g in range(groups):
        lo = g * rows
        hi = lo + rows
        s = jnp.sum(srow[lo:hi, :])
        ss = jnp.sum(ssrow[lo:hi, :])
        mean = s / count
        var = jnp.maximum(ss / count - mean * mean, 0.0)    # clamp >= 0
        inv = lax.rsqrt(var + eps)
        scale = gam_ref[lo:hi, :] * inv                     # (rows, 1)
        bias = bet_ref[lo:hi, :] - mean * scale             # (rows, 1)
        blk = acc_ref[lo:hi, :]                             # (rows, HW)
        o_ref[0, lo:hi, :] = jnp.maximum(blk * scale + bias, 0.0)


# ------------------------------ wrapper (JAX) --------------------------------

def conv_trans_gn_relu(x, wt, gamma, beta, *, groups, eps=1e-5):
    """ConvTransGnReLU.forward.

    x:     (N, Cin, H, W)       NCHW input
    wt:    (Cin, Cout, 3, 3)    ConvTranspose2d weight
    gamma: (Cout,)              GroupNorm weight
    beta:  (Cout,)              GroupNorm bias
    returns (N, Cout, 2H, 2W)   float32
    """
    # TODO(synk): only the (kernel=3, stride=2, pad=1, output_pad=1) config is
    # implemented; the module's literal defaults (stride=1, output_padding=1)
    # are rejected by PyTorch itself (output_padding must be < stride).
    N, Cin, H, W = x.shape
    Cout = wt.shape[1]
    HW = H * W
    G = groups
    assert Cout % G == 0
    cs = Cout // G
    assert HW % 128 == 0, "H*W must be a multiple of 128 (lane-dense layout)"
    assert (4 * cs) % 8 == 0, "4*channels-per-group must be sublane aligned"
    assert H >= 2 and W >= 2

    # Only x itself goes to the kernel (no tap duplication, no pad/concat).
    xf = x.astype(jnp.float32).reshape(N, Cin, HW)

    # Boundary-validity masks (trace-time constants, tiny inputs).
    col = np.arange(HW)
    mask_j = jnp.asarray(col % W != W - 1, jnp.float32).reshape(1, HW)
    mask_i = jnp.asarray(col < (H - 1) * W, jnp.float32).reshape(1, HW)

    # Phase-decomposed ConvTranspose weights, group-major row order, bf16.
    #   row r = g*(4*cs) + p*cs + c  <->  out channel o = g*cs + c, phase p
    #   p = 2*di + dj :  y[2i+di, 2j+dj] += B[t][r, :] . tap_t[:, i*W + j]
    #     y[2i  ,2j  ] = W[:,:,1,1].x[i,j]
    #     y[2i  ,2j+1] = W[:,:,1,2].x[i,j]   + W[:,:,1,0].x[i,j+1]
    #     y[2i+1,2j  ] = W[:,:,2,1].x[i,j]   + W[:,:,0,1].x[i+1,j]
    #     y[2i+1,2j+1] = W[:,:,2,2].x[i,j]   + W[:,:,2,0].x[i,j+1]
    #                  + W[:,:,0,2].x[i+1,j] + W[:,:,0,0].x[i+1,j+1]
    wf = jnp.transpose(wt.astype(jnp.float32), (2, 3, 1, 0))  # (kh,kw,Cout,Cin)
    z = jnp.zeros((Cout, Cin), jnp.float32)

    def pack(p0, p1, p2, p3):
        # (4, Cout, Cin) phase-major -> (4*Cout, Cin) group-major rows
        P = jnp.stack([p0, p1, p2, p3], axis=0)
        return P.reshape(4, G, cs, Cin).transpose(1, 0, 2, 3).reshape(4 * Cout, Cin)

    b = jnp.stack([
        pack(wf[1, 1], wf[1, 2], wf[2, 1], wf[2, 2]),   # tap x[i, j]
        pack(z,        wf[1, 0], z,        wf[2, 0]),   # tap x[i, j+1]
        pack(z,        z,        wf[0, 1], wf[0, 2]),   # tap x[i+1, j]
        pack(z,        z,        z,        wf[0, 0]),   # tap x[i+1, j+1]
    ], axis=0).astype(jnp.bfloat16)                      # (4, 4*Cout, Cin)

    # Per-row (group-major) GroupNorm affine parameters.
    gamma_rows = jnp.broadcast_to(
        gamma.astype(jnp.float32).reshape(G, 1, cs), (G, 4, cs)).reshape(4 * Cout, 1)
    beta_rows = jnp.broadcast_to(
        beta.astype(jnp.float32).reshape(G, 1, cs), (G, 4, cs)).reshape(4 * Cout, 1)

    kernel = functools.partial(_fused_deconv_gn_relu_kernel,
                               cout=Cout, groups=G, eps=eps, width=W)

    # Explicit VMEM budget (double-buffered in/out blocks + weights + scratch).
    est = (2 * (Cin * HW * 4 + 4 * Cout * HW * 4)          # pipelined blocks
           + 4 * 4 * Cout * max(Cin, 128) * 2              # bf16 weights (padded)
           + 4 * Cout * HW * 4                             # f32 conv scratch
           + 2 * 4 * Cout * 128 * 4 + 2 * 8 * HW * 4)      # gamma/beta, masks
    vmem_limit = int(min(64 * 2 ** 20, max(32 * 2 ** 20, 2 * est)))
    # TODO(synk): for production shapes whose per-sample slab exceeds v7x's
    # 64 MiB VMEM, add an HW-tile grid axis with partial-sum GroupNorm stats and
    # a second normalize sweep (also gives a 2nd parallel axis when N is small).

    out_packed = pl.pallas_call(
        kernel,
        out_shape=jax.ShapeDtypeStruct((N, 4 * Cout, HW), jnp.float32),
        grid=(N,),
        in_specs=[
            pl.BlockSpec((1, Cin, HW), lambda n: (n, 0, 0)),
            pl.BlockSpec((4, 4 * Cout, Cin), lambda n: (0, 0, 0)),
            pl.BlockSpec((1, HW), lambda n: (0, 0)),
            pl.BlockSpec((1, HW), lambda n: (0, 0)),
            pl.BlockSpec((4 * Cout, 1), lambda n: (0, 0)),
            pl.BlockSpec((4 * Cout, 1), lambda n: (0, 0)),
        ],
        out_specs=pl.BlockSpec((1, 4 * Cout, HW), lambda n: (n, 0, 0)),
        scratch_shapes=[pltpu.VMEM((4 * Cout, HW), jnp.float32)],
        compiler_params=pltpu.CompilerParams(
            dimension_semantics=("parallel",),
            vmem_limit_bytes=vmem_limit),
    )(xf, b, mask_j, mask_i, gamma_rows, beta_rows)

    # Depth-to-space + NCHW relayout at the API boundary only.
    # TODO(synk): downstream consumers could read the packed (N, 4*Cout, HW)
    # layout directly and skip this extra HBM pass.
    out = out_packed.reshape(N, G, 2, 2, cs, H, W)
    out = jnp.transpose(out, (0, 1, 4, 5, 2, 6, 3)).reshape(N, Cout, 2 * H, 2 * W)
    return out


# ------------------------------ reference (XLA) ------------------------------

def _reference(x, wt, gamma, beta, groups, eps=1e-5):
    # ConvTranspose2d(k=3, s=2, p=1, op=1) == dilated conv with the spatially
    # flipped, channel-transposed kernel.
    w = jnp.transpose(wt, (1, 0, 2, 3))[:, :, ::-1, ::-1]     # (Cout,Cin,3,3)
    y = lax.conv_general_dilated(
        x, w, window_strides=(1, 1), padding=((1, 2), (1, 2)),
        lhs_dilation=(2, 2), rhs_dilation=(1, 1),
        dimension_numbers=("NCHW", "OIHW", "NCHW"))
    N, C, Ho, Wo = y.shape
    cs = C // groups
    yg = y.reshape(N, groups, cs * Ho * Wo)
    mean = jnp.mean(yg, axis=2, keepdims=True)
    var = jnp.mean((yg - mean) ** 2, axis=2, keepdims=True)
    yn = ((yg - mean) * lax.rsqrt(var + eps)).reshape(N, C, Ho, Wo)
    yn = yn * gamma[None, :, None, None] + beta[None, :, None, None]
    return jnp.maximum(yn, 0.0)


# --------------------------------- driver ------------------------------------

if __name__ == "__main__":
    key = jax.random.PRNGKey(0)
    k1, k2 = jax.random.split(key)

    N, Cin, Cout, H, W = 2, 16, 16, 16, 16
    groups = max(1, Cout // 8)                    # GroupNorm G

    x = jax.random.normal(k1, (N, Cin, H, W), jnp.float32)
    wt = 0.1 * jax.random.normal(k2, (Cin, Cout, 3, 3), jnp.float32)
    gamma = jnp.ones((Cout,), jnp.float32)        # nn.GroupNorm default init
    beta = jnp.zeros((Cout,), jnp.float32)

    out = conv_trans_gn_relu(x, wt, gamma, beta, groups=groups)
    out = jax.block_until_ready(out)
    assert out.shape == (N, Cout, 2 * H, 2 * W), out.shape
    assert bool(jnp.all(jnp.isfinite(out)))

    ref = _reference(x, wt, gamma, beta, groups)
    err = float(jnp.max(jnp.abs(out - ref)))
    # bf16 MXU operands perturb the conv (and hence the GroupNorm stats)
    # slightly vs. the pure-f32 reference; a gross packing/shift bug would be
    # O(1), so 5e-2 is still a meaningful correctness gate.
    assert err < 5e-2, f"max abs error vs reference: {err}"

    print("KERNEL_OK")
</pallas_src>

<mosaic_0001>
module attributes {stable_mosaic.version = 11 : i64} {
  func.func @_fused_deconv_gn_relu_kernel(%arg0: i32, %arg1: memref<1x16x256xf32, #tpu.memory_space<vmem>>, %arg2: memref<4x64x16xbf16, #tpu.memory_space<vmem>>, %arg3: memref<1x256xf32, #tpu.memory_space<vmem>>, %arg4: memref<1x256xf32, #tpu.memory_space<vmem>>, %arg5: memref<64x1xf32, #tpu.memory_space<vmem>>, %arg6: memref<64x1xf32, #tpu.memory_space<vmem>>, %arg7: memref<1x64x256xf32, #tpu.memory_space<vmem>>, %arg8: memref<64x256xf32, #tpu.memory_space<vmem>>) attributes {dimension_semantics = [#tpu.dimension_semantics<parallel>], iteration_bounds = array<i64: 2>, scalar_prefetch = 0 : i64, scratch_operands = 1 : i64, tpu.core_type = #tpu.core_type<tc>, window_params = [{transform_indices = @transform_0, window_bounds = array<i64: 1, 16, 256>}, {pipeline_mode = #tpu.pipeline_mode<synchronous>, transform_indices = @transform_1, window_bounds = array<i64: 4, 64, 16>}, {pipeline_mode = #tpu.pipeline_mode<synchronous>, transform_indices = @transform_2, window_bounds = array<i64: 1, 256>}, {pipeline_mode = #tpu.pipeline_mode<synchronous>, transform_indices = @transform_3, window_bounds = array<i64: 1, 256>}, {pipeline_mode = #tpu.pipeline_mode<synchronous>, transform_indices = @transform_4, window_bounds = array<i64: 64, 1>}, {pipeline_mode = #tpu.pipeline_mode<synchronous>, transform_indices = @transform_5, window_bounds = array<i64: 64, 1>}, {transform_indices = @transform_6, window_bounds = array<i64: 1, 64, 256>}]} {
    %c0 = arith.constant 0 : index
    %c0_0 = arith.constant 0 : index
    %c0_1 = arith.constant 0 : index
    %0 = vector.load %arg1[%c0, %c0_0, %c0_1] : memref<1x16x256xf32, #tpu.memory_space<vmem>>, vector<1x16x256xf32>
    %1 = vector.shape_cast %0 : vector<1x16x256xf32> to vector<16x256xf32>
    %c0_2 = arith.constant 0 : index
    %c0_3 = arith.constant 0 : index
    %2 = vector.load %arg3[%c0_2, %c0_3] : memref<1x256xf32, #tpu.memory_space<vmem>>, vector<1x256xf32>
    %c0_4 = arith.constant 0 : index
    %c0_5 = arith.constant 0 : index
    %3 = vector.load %arg4[%c0_4, %c0_5] : memref<1x256xf32, #tpu.memory_space<vmem>>, vector<1x256xf32>
    %c255_i32 = arith.constant 255 : i32
    %4 = tpu.dynamic_rotate %1 by %c255_i32 dim 1 : vector<16x256xf32>, i32 -> vector<16x256xf32>
    %5 = vector.broadcast %2 : vector<1x256xf32> to vector<16x256xf32>
    %6 = arith.mulf %4, %5 : vector<16x256xf32>
    %c240_i32 = arith.constant 240 : i32
    %7 = tpu.dynamic_rotate %1 by %c240_i32 dim 1 : vector<16x256xf32>, i32 -> vector<16x256xf32>
    %8 = vector.broadcast %3 : vector<1x256xf32> to vector<16x256xf32>
    %9 = arith.mulf %7, %8 : vector<16x256xf32>
    %c239_i32 = arith.constant 239 : i32
    %10 = tpu.dynamic_rotate %1 by %c239_i32 dim 1 : vector<16x256xf32>, i32 -> vector<16x256xf32>
    %11 = arith.mulf %2, %3 : vector<1x256xf32>
    %12 = vector.broadcast %11 : vector<1x256xf32> to vector<16x256xf32>
    %13 = arith.mulf %10, %12 : vector<16x256xf32>
    %c0_6 = arith.constant 0 : index
    %c0_7 = arith.constant 0 : index
    %c0_8 = arith.constant 0 : index
    %14 = vector.load %arg2[%c0_6, %c0_7, %c0_8] : memref<4x64x16xbf16, #tpu.memory_space<vmem>>, vector<1x64x16xbf16>
    %15 = vector.shape_cast %14 : vector<1x64x16xbf16> to vector<64x16xbf16>
    %16 = arith.truncf %1 : vector<16x256xf32> to vector<16x256xbf16>
    %cst = arith.constant dense<0.000000e+00> : vector<64x256xf32>
    %17 = tpu.matmul %15, %16, %cst {dimension_numbers = #tpu.dot_dimension_numbers<[1], [0], [0], [1], [0, 0, 1, 1], [], []>} : vector<64x16xbf16>, vector<16x256xbf16>, vector<64x256xf32> -> vector<64x256xf32>
    %c1 = arith.constant 1 : index
    %c0_9 = arith.constant 0 : index
    %c0_10 = arith.constant 0 : index
    %18 = vector.load %arg2[%c1, %c0_9, %c0_10] : memref<4x64x16xbf16, #tpu.memory_space<vmem>>, vector<1x64x16xbf16>
    %19 = vector.shape_cast %18 : vector<1x64x16xbf16> to vector<64x16xbf16>
    %20 = arith.truncf %6 : vector<16x256xf32> to vector<16x256xbf16>
    %cst_11 = arith.constant dense<0.000000e+00> : vector<64x256xf32>
    %21 = tpu.matmul %19, %20, %cst_11 {dimension_numbers = #tpu.dot_dimension_numbers<[1], [0], [0], [1], [0, 0, 1, 1], [], []>} : vector<64x16xbf16>, vector<16x256xbf16>, vector<64x256xf32> -> vector<64x256xf32>
    %22 = arith.addf %17, %21 : vector<64x256xf32>
    %c2 = arith.constant 2 : index
    %c0_12 = arith.constant 0 : index
    %c0_13 = arith.constant 0 : index
    %23 = vector.load %arg2[%c2, %c0_12, %c0_13] : memref<4x64x16xbf16, #tpu.memory_space<vmem>>, vector<1x64x16xbf16>
    %24 = vector.shape_cast %23 : vector<1x64x16xbf16> to vector<64x16xbf16>
    %25 = arith.truncf %9 : vector<16x256xf32> to vector<16x256xbf16>
    %cst_14 = arith.constant dense<0.000000e+00> : vector<64x256xf32>
    %26 = tpu.matmul %24, %25, %cst_14 {dimension_numbers = #tpu.dot_dimension_numbers<[1], [0], [0], [1], [0, 0, 1, 1], [], []>} : vector<64x16xbf16>, vector<16x256xbf16>, vector<64x256xf32> -> vector<64x256xf32>
    %27 = arith.addf %22, %26 : vector<64x256xf32>
    %c3 = arith.constant 3 : index
    %c0_15 = arith.constant 0 : index
    %c0_16 = arith.constant 0 : index
    %28 = vector.load %arg2[%c3, %c0_15, %c0_16] : memref<4x64x16xbf16, #tpu.memory_space<vmem>>, vector<1x64x16xbf16>
    %29 = vector.shape_cast %28 : vector<1x64x16xbf16> to vector<64x16xbf16>
    %30 = arith.truncf %13 : vector<16x256xf32> to vector<16x256xbf16>
    %cst_17 = arith.constant dense<0.000000e+00> : vector<64x256xf32>
    %31 = tpu.matmul %29, %30, %cst_17 {dimension_numbers = #tpu.dot_dimension_numbers<[1], [0], [0], [1], [0, 0, 1, 1], [], []>} : vector<64x16xbf16>, vector<16x256xbf16>, vector<64x256xf32> -> vector<64x256xf32>
    %32 = arith.addf %27, %31 : vector<64x256xf32>
    %c0_18 = arith.constant 0 : index
    %c0_19 = arith.constant 0 : index
    %33 = vector.load %arg8[%c0_18, %c0_19] : memref<64x256xf32, #tpu.memory_space<vmem>>, vector<64x256xf32>
    tpu.vector_store %arg8[%c0_18, %c0_19], %32 {strides = array<i32>} : memref<64x256xf32, #tpu.memory_space<vmem>>, vector<64x256xf32>,
    %cst_20 = arith.constant dense<0.000000e+00> : vector<64xf32>
    %34 = vector.multi_reduction <add>, %32, %cst_20 [1] : vector<64x256xf32> to vector<64xf32>
    %35 = vector.shape_cast %34 : vector<64xf32> to vector<64x1xf32>
    %36 = arith.mulf %32, %32 : vector<64x256xf32>
    %cst_21 = arith.constant dense<0.000000e+00> : vector<64xf32>
    %37 = vector.multi_reduction <add>, %36, %cst_21 [1] : vector<64x256xf32> to vector<64xf32>
    %38 = vector.shape_cast %37 : vector<64xf32> to vector<64x1xf32>
    %39 = vector.extract_strided_slice %35 {offsets = [0, 0], sizes = [32, 1], strides = [1, 1]} : vector<64x1xf32> to vector<32x1xf32>
    %40 = vector.shape_cast %39 : vector<32x1xf32> to vector<1x32x1xf32>
    %cst_22 = arith.constant dense<0.000000e+00> : vector<1xf32>
    %41 = vector.multi_reduction <add>, %40, %cst_22 [1, 2] : vector<1x32x1xf32> to vector<1xf32>
    %42 = vector.shape_cast %41 : vector<1xf32> to vector<1x1x1xf32>
    %43 = vector.extract %42[0, 0, 0] : f32 from vector<1x1x1xf32>
    %44 = vector.extract_strided_slice %38 {offsets = [0, 0], sizes = [32, 1], strides = [1, 1]} : vector<64x1xf32> to vector<32x1xf32>
    %45 = vector.shape_cast %44 : vector<32x1xf32> to vector<1x32x1xf32>
    %cst_23 = arith.constant dense<0.000000e+00> : vector<1xf32>
    %46 = vector.multi_reduction <add>, %45, %cst_23 [1, 2] : vector<1x32x1xf32> to vector<1xf32>
    %47 = vector.shape_cast %46 : vector<1xf32> to vector<1x1x1xf32>
    %48 = vector.extract %47[0, 0, 0] : f32 from vector<1x1x1xf32>
    %cst_24 = arith.constant 8.192000e+03 : f32
    %49 = arith.divf %43, %cst_24 : f32
    %cst_25 = arith.constant 8.192000e+03 : f32
    %50 = arith.divf %48, %cst_25 : f32
    %51 = arith.mulf %49, %49 : f32
    %52 = arith.subf %50, %51 : f32
    %cst_26 = arith.constant 0.000000e+00 : f32
    %53 = arith.maximumf %52, %cst_26 : f32
    %cst_27 = arith.constant 9.99999974E-6 : f32
    %54 = arith.addf %53, %cst_27 : f32
    %55 = math.rsqrt %54 : f32
    %c0_28 = arith.constant 0 : index
    %c0_29 = arith.constant 0 : index
    %56 = vector.load %arg5[%c0_28, %c0_29] : memref<64x1xf32, #tpu.memory_space<vmem>>, vector<32x1xf32>
    %57 = vector.broadcast %55 : f32 to vector<32x1xf32>
    %58 = arith.mulf %56, %57 : vector<32x1xf32>
    %c0_30 = arith.constant 0 : index
    %c0_31 = arith.constant 0 : index
    %59 = vector.load %arg6[%c0_30, %c0_31] : memref<64x1xf32, #tpu.memory_space<vmem>>, vector<32x1xf32>
    %60 = vector.broadcast %49 : f32 to vector<32x1xf32>
    %61 = arith.mulf %60, %58 : vector<32x1xf32>
    %62 = arith.subf %59, %61 : vector<32x1xf32>
    %c0_32 = arith.constant 0 : index
    %c0_33 = arith.constant 0 : index
    %63 = vector.load %arg8[%c0_32, %c0_33] : memref<64x256xf32, #tpu.memory_space<vmem>>, vector<32x256xf32>
    %64 = vector.broadcast %58 : vector<32x1xf32> to vector<32x256xf32>
    %65 = arith.mulf %63, %64 : vector<32x256xf32>
    %66 = vector.broadcast %62 : vector<32x1xf32> to vector<32x256xf32>
    %67 = arith.addf %65, %66 : vector<32x256xf32>
    %cst_34 = arith.constant 0.000000e+00 : f32
    %68 = vector.broadcast %cst_34 : f32 to vector<32x256xf32>
    %69 = arith.maximumf %67, %68 : vector<32x256xf32>
    %c0_35 = arith.constant 0 : index
    %c0_36 = arith.constant 0 : index
    %c0_37 = arith.constant 0 : index
    %70 = vector.load %arg7[%c0_35, %c0_36, %c0_37] : memref<1x64x256xf32, #tpu.memory_space<vmem>>, vector<1x32x256xf32>
    %71 = vector.shape_cast %70 : vector<1x32x256xf32> to vector<32x256xf32>
    %72 = vector.shape_cast %69 : vector<32x256xf32> to vector<1x32x256xf32>
    tpu.vector_store %arg7[%c0_35, %c0_36, %c0_37], %72 {strides = array<i32>} : memref<1x64x256xf32, #tpu.memory_space<vmem>>, vector<1x32x256xf32>,
    %73 = vector.extract_strided_slice %35 {offsets = [32, 0], sizes = [32, 1], strides = [1, 1]} : vector<64x1xf32> to vector<32x1xf32>
    %74 = vector.shape_cast %73 : vector<32x1xf32> to vector<1x32x1xf32>
    %cst_38 = arith.constant dense<0.000000e+00> : vector<1xf32>
    %75 = vector.multi_reduction <add>, %74, %cst_38 [1, 2] : vector<1x32x1xf32> to vector<1xf32>
    %76 = vector.shape_cast %75 : vector<1xf32> to vector<1x1x1xf32>
    %77 = vector.extract %76[0, 0, 0] : f32 from vector<1x1x1xf32>
    %78 = vector.extract_strided_slice %38 {offsets = [32, 0], sizes = [32, 1], strides = [1, 1]} : vector<64x1xf32> to vector<32x1xf32>
    %79 = vector.shape_cast %78 : vector<32x1xf32> to vector<1x32x1xf32>
    %cst_39 = arith.constant dense<0.000000e+00> : vector<1xf32>
    %80 = vector.multi_reduction <add>, %79, %cst_39 [1, 2] : vector<1x32x1xf32> to vector<1xf32>
    %81 = vector.shape_cast %80 : vector<1xf32> to vector<1x1x1xf32>
    %82 = vector.extract %81[0, 0, 0] : f32 from vector<1x1x1xf32>
    %cst_40 = arith.constant 8.192000e+03 : f32
    %83 = arith.divf %77, %cst_40 : f32
    %cst_41 = arith.constant 8.192000e+03 : f32
    %84 = arith.divf %82, %cst_41 : f32
    %85 = arith.mulf %83, %83 : f32
    %86 = arith.subf %84, %85 : f32
    %cst_42 = arith.constant 0.000000e+00 : f32
    %87 = arith.maximumf %86, %cst_42 : f32
    %cst_43 = arith.constant 9.99999974E-6 : f32
    %88 = arith.addf %87, %cst_43 : f32
    %89 = math.rsqrt %88 : f32
    %c32 = arith.constant 32 : index
    %c0_44 = arith.constant 0 : index
    %90 = vector.load %arg5[%c32, %c0_44] : memref<64x1xf32, #tpu.memory_space<vmem>>, vector<32x1xf32>
    %91 = vector.broadcast %89 : f32 to vector<32x1xf32>
    %92 = arith.mulf %90, %91 : vector<32x1xf32>
    %c32_45 = arith.constant 32 : index
    %c0_46 = arith.constant 0 : index
    %93 = vector.load %arg6[%c32_45, %c0_46] : memref<64x1xf32, #tpu.memory_space<vmem>>, vector<32x1xf32>
    %94 = vector.broadcast %83 : f32 to vector<32x1xf32>
    %95 = arith.mulf %94, %92 : vector<32x1xf32>
    %96 = arith.subf %93, %95 : vector<32x1xf32>
    %c32_47 = arith.constant 32 : index
    %c0_48 = arith.constant 0 : index
    %97 = vector.load %arg8[%c32_47, %c0_48] : memref<64x256xf32, #tpu.memory_space<vmem>>, vector<32x256xf32>
    %98 = vector.broadcast %92 : vector<32x1xf32> to vector<32x256xf32>
    %99 = arith.mulf %97, %98 : vector<32x256xf32>
    %100 = vector.broadcast %96 : vector<32x1xf32> to vector<32x256xf32>
    %101 = arith.addf %99, %100 : vector<32x256xf32>
    %cst_49 = arith.constant 0.000000e+00 : f32
    %102 = vector.broadcast %cst_49 : f32 to vector<32x256xf32>
    %103 = arith.maximumf %101, %102 : vector<32x256xf32>
    %c0_50 = arith.constant 0 : index
    %c32_51 = arith.constant 32 : index
    %c0_52 = arith.constant 0 : index
    %104 = vector.load %arg7[%c0_50, %c32_51, %c0_52] : memref<1x64x256xf32, #tpu.memory_space<vmem>>, vector<1x32x256xf32>
    %105 = vector.shape_cast %104 : vector<1x32x256xf32> to vector<32x256xf32>
    %106 = vector.shape_cast %103 : vector<32x256xf32> to vector<1x32x256xf32>
    tpu.vector_store %arg7[%c0_50, %c32_51, %c0_52], %106 {strides = array<i32>} : memref<1x64x256xf32, #tpu.memory_space<vmem>>, vector<1x32x256xf32>,
    return
  }
  func.func @transform_0(%arg0: i32) -> (i32, i32, i32) {
    %c0_i32 = arith.constant 0 : i32
    %c0_i32_0 = arith.constant 0 : i32
    %c0_i32_1 = arith.constant 0 : i32
    return %arg0, %c0_i32, %c0_i32_0 : i32, i32, i32
  }
  func.func @transform_1(%arg0: i32) -> (i32, i32, i32) {
    %c0_i32 = arith.constant 0 : i32
    %c0_i32_0 = arith.constant 0 : i32
    %c0_i32_1 = arith.constant 0 : i32
    %c0_i32_2 = arith.constant 0 : i32
    return %c0_i32, %c0_i32_0, %c0_i32_1 : i32, i32, i32
  }
  func.func @transform_2(%arg0: i32) -> (i32, i32) {
    %c0_i32 = arith.constant 0 : i32
    %c0_i32_0 = arith.constant 0 : i32
    %c0_i32_1 = arith.constant 0 : i32
    return %c0_i32, %c0_i32_0 : i32, i32
  }
  func.func @transform_3(%arg0: i32) -> (i32, i32) {
    %c0_i32 = arith.constant 0 : i32
    %c0_i32_0 = arith.constant 0 : i32
    %c0_i32_1 = arith.constant 0 : i32
    return %c0_i32, %c0_i32_0 : i32, i32
  }
  func.func @transform_4(%arg0: i32) -> (i32, i32) {
    %c0_i32 = arith.constant 0 : i32
    %c0_i32_0 = arith.constant 0 : i32
    %c0_i32_1 = arith.constant 0 : i32
    return %c0_i32, %c0_i32_0 : i32, i32
  }
  func.func @transform_5(%arg0: i32) -> (i32, i32) {
    %c0_i32 = arith.constant 0 : i32
    %c0_i32_0 = arith.constant 0 : i32
    %c0_i32_1 = arith.constant 0 : i32
    return %c0_i32, %c0_i32_0 : i32, i32
  }
  func.func @transform_6(%arg0: i32) -> (i32, i32, i32) {
    %c0_i32 = arith.constant 0 : i32
    %c0_i32_0 = arith.constant 0 : i32
    %c0_i32_1 = arith.constant 0 : i32
    return %arg0, %c0_i32, %c0_i32_0 : i32, i32, i32
  }
}

</mosaic_0001>

<bundles_post_ra>
// kernel: tpu_custom_call.1
= control target key start
LH: loop header
LB: loop body
LE: loop exit
PB: predicated region body
PF: predicated region fallthrough
CT: control target
= control target key end

     0   :  { %11 = vsyncpa [#allocation4], 0  ;;  %s1976_s0 = inlined_call_operand.vmem [shape: f32[2,16,256], index: 0, kind: input, shape index: {}]   ;;  %s1977_s1 = inlined_call_operand.vmem [shape: bf16[4,64,16], index: 1, kind: input, shape index: {}]   ;;  %s1978_s2 = inlined_call_operand.vmem [shape: f32[1,256], index: 2, kind: input, shape index: {}]   ;;  %s1979_s3 = inlined_call_operand.vmem [shape: f32[1,256], index: 3, kind: input, shape index: {}]   ;;  %s1980_s4 = inlined_call_operand.vmem [shape: f32[64,1], index: 4, kind: input, shape index: {}]   ;;  %s1981_s5 = inlined_call_operand.vmem [shape: f32[64,1], index: 5, kind: input, shape index: {}]   ;;  %s1982_s6 = inlined_call_operand.hbm [shape: f32[2,64,256], index: 6, kind: output, shape index: {}]  }
   0x1   :  { %13 = vsyncpa [#allocation4 + $0x1], 0  ;;  %s1546_s21 = smov 0   ;;  %s1548_s22 = smov 0  }
   0x2   :  { %s1550_s23 = smov 0   ;;  %s1552_s24 = smov 0  }
   0x3 LB: > { %s1567_s25 = sadd.s32 4294967295, %s1501_s24   ;;  %s1291_s26 = sadd.s32 4294967294, %s1501_s24   ;;  %s1501_s24 = sphi %s1552_s24, %s1988_s24   ;;  %s1497_s23 = sphi %s1550_s23, %s1987_s23   ;;  %s1493_s22 = sphi %s1548_s22, %s1986_s22   ;;  %s1489_s21 = sphi %s1546_s21, %s1985_s21  }
   0x4   : > { %s1571_s27 = sadd.s32 1, %s1501_s24   ;;  %s157_s28 = sadd.s32 1, %s1497_s23 }
   0x5   : > { %s154_s29 = ssub.s32 %s1501_s24, %s1571_s27  ;;  %p167_p0 = scmp.ne.s32.totalorder %s1497_s23, %s1493_s22 }
   0x6   : > { %p155_p1 = scmp.eq.s32.totalorder %s154_s29, 0  ;;  %p168_p2 = scmp.eq.s32.totalorder %s1567_s25, 1 }
   0x7   : > { %p173_p3 = scmp.ne.s32.totalorder %s1493_s22, %s1489_s21  ;;  %p174_p4 = scmp.eq.s32.totalorder %s1291_s26, 1 }
   0x8   : > { %s1582_s30 = scalar_select %p155_p1, %s1497_s23, %s157_s28  }
   0x9   : > { %p1584_p5 = por %p168_p2, %p167_p0  ;;  %p1588_p6 = por %p174_p4, %p173_p3 }
   0xa   : > { %p1294_p7 = scmp.ge.s32.totalorder %s1501_s24, 1  ;;  %p215_p8 = scmp.lt.s32.totalorder %s1501_s24, 3 }
   0xc   : > { %p216_p9 = pnand %p1294_p7, %p215_p8 }
   0xd   : > { %p245_p10 = scmp.lt.s32.totalorder (!%p216_p9), %s1567_s25, 1  ;;  %s1504_s14 = smov (!%p216_p9), 127  }
   0xe   : > { %219 = sbr.rel (%p216_p9) target bundleno = 1116 (0x45c), region = 44  ;;  %s1505_s17 = smov (!%p216_p9), 112  }
   0xf   : > { %s1506_s20 = smov (!%p216_p9), 111   ;;  %s1360_s19 = sshll.u32 (!%p216_p9), %s1567_s25, 11 }
  0x13   : > { %s246_s9 = scalar_select %p245_p10, %s1567_s25, 1  ;;  %v1503_v0 = vmov 0   ;;  %vm385_vm0 = vcmask 130048   ;;  %v1422_v7 = vld [vmem:[%s1977_s1] sm:$0xff]   ;;  %v1424_v8 = vld [vmem:[%s1977_s1 + $0x8] sm:$0xff]   ;;  %v1426_v9 = vld [vmem:[%s1977_s1 + $0x10] sm:$0xff]   ;;  %v265_v11 = vlaneseq }
  0x14   : > { %430 = vmatprep.mubr.bf16.mxu0 %v1503_v0  ;;  %535 = vmatprep.mubr.bf16.mxu1 %v1503_v0  ;;  %v1428_v10 = vld [vmem:[%s1977_s1 + $0x18] sm:$0xff]   ;;  %v255_v16 = vld [vmem:[%s1978_s2] sm:$0x3]  ;;  %v1423_v56 = vld [vmem:[%s1977_s1 + $0x28] sm:$0xff]   ;;  %vm920_vm4 = vcmask 7168  }
  0x15   : > { %1420 = vset.pattern.permute.xlu0 %v1503_v0  ;;  %1419 = vset.pattern.permute.xlu1 %v1503_v0  ;;  %s1359_s10 = sshll.u32 %s246_s9, 5  ;;  %v274_v12 = vshrl.u32 %v265_v11, 7  ;;  %v266_v13 = vand.u32 127, %v265_v11  ;;  %v256_v31 = vld [vmem:[%s1979_s3] sm:$0x3]  ;;  %v1434_v11 = vld [vmem:[%s1977_s1 + $0x70] sm:$0xff]  }
  0x16   : > { %s249_s13 = scalar_lea.vmem %s1976_s0, %s1359_s10  ;;  %v1421_v38 = vld [vmem:[%s1977_s1 + $0x20] sm:$0xff]   ;;  %v328_v41 = vmul.f32 %v256_v31, %v255_v16 }
  0x17   : > { %v252_v1 = vld [vmem:[%s249_s13 + $0x8] sm:$0xff]  ;;  %v251_v2 = vld [vmem:[%s249_s13] sm:$0xff]  ;;  %v254_v3 = vld [vmem:[%s249_s13 + $0x18] sm:$0xff]  ;;  %v275_v14 = vsub.s32 0, %v274_v12  ;;  %v279_v15 = vsub.s32 1, %v274_v12  ;;  %vm267_vm1 = vcmp.lt.s32.totalorder %v266_v13, 127 }
  0x18   : > { %261 = vrot.lane.b32.xlu1 %v252_v1, %s1504_s14  ;;  %257 = vrot.lane.b32.xlu0 %v251_v2, %s1504_s14  ;;  %v253_v4 = vld [vmem:[%s249_s13 + $0x10] sm:$0xff]  ;;  %v353_v5 = vpack.c.bf16 %v254_v3, %v252_v1  ;;  %vm295_vm2 = vcmp.lt.s32.totalorder %v266_v13, 112  ;;  %vm323_vm3 = vcmp.lt.s32.totalorder %v266_v13, 111  ;;  %v1431_v12 = vld [vmem:[%s1977_s1 + $0x48] sm:$0xff]  }
  0x19   : > { %v352_v6 = vpack.c.bf16 %v253_v4, %v251_v2  ;;  %v276_v19 = vrot.slane %v255_v16, %v275_v14  ;;  %v280_v20 = vrot.slane %v255_v16, %v279_v15  ;;  %v304_v36 = vrot.slane %v256_v31, %v275_v14  ;;  %v1436_v13 = vld [vmem:[%s1977_s1 + $0x78] sm:$0xff]  }
  0x1a   : > { %517 = vmatprep.subr.bf16.mxu1 %v353_v5  ;;  %v308_v37 = vrot.slane %v256_v31, %v279_v15  ;;  %v333_v54 = vrot.slane %v328_v41, %v275_v14  ;;  %v337_v55 = vrot.slane %v328_v41, %v279_v15  ;;  %v1433_v14 = vld [vmem:[%s1977_s1 + $0x50] sm:$0xff]   ;;  %v1435_v15 = vld [vmem:[%s1977_s1 + $0x58] sm:$0xff]  }
  0x1b   : > { %518 = vmatpush1.bf16.msra.mxu1 %v352_v6  ;;  %v1425_v6 = vld [vmem:[%s1977_s1 + $0x30] sm:$0xff]  }
  0x1c   : > { %263 = vrot.lane.b32.xlu1 %v254_v3, %s1504_s14  ;;  %259 = vrot.lane.b32.xlu0 %v253_v4, %s1504_s14  ;;  %s1507_s14 = smov 0.0  }
  0x1e   : > { %1318 = vmatmul.mubr.msk.bf16.vlgmr.msra.gmra.mxu1 %vm385_vm0, %v1422_v7  ;;  %v1430_v7 = vld [vmem:[%s1977_s1 + $0x60] sm:$0xff]  }
  0x1f   : > { %545 = vmatprep.mubr.bf16.mxu1 %v1503_v0 }
  0x20   : > { %289 = vrot.lane.b32.xlu1 %v253_v4, %s1505_s17  ;;  %287 = vrot.lane.b32.xlu0 %v251_v2, %s1505_s17 }
  0x24   : > { %293 = vrot.lane.b32.xlu1 %v254_v3, %s1505_s17  ;;  %291 = vrot.lane.b32.xlu0 %v252_v1, %s1505_s17 }
  0x26   : > { %1319 = vmatmul.mubr.msk.bf16.gmra.mxu1 %vm385_vm0, %v1424_v8  ;;  %v1427_v8 = vld [vmem:[%s1977_s1 + $0x38] sm:$0xff]  }
  0x27   : > { %555 = vmatprep.mubr.bf16.mxu1 %v1503_v0 }
  0x28   : > { %317 = vrot.lane.b32.xlu1 %v253_v4, %s1506_s20  ;;  %315 = vrot.lane.b32.xlu0 %v251_v2, %s1506_s20 }
  0x2c   : > { %321 = vrot.lane.b32.xlu1 %v254_v3, %s1506_s20  ;;  %319 = vrot.lane.b32.xlu0 %v252_v1, %s1506_s20 }
  0x2e   : > { %1320 = vmatmul.mubr.msk.bf16.gmra.mxu1 %vm385_vm0, %v1426_v9  ;;  %v1432_v9 = vld [vmem:[%s1977_s1 + $0x68] sm:$0xff]  }
  0x2f   : > { %565 = vmatprep.mubr.bf16.mxu1 %v1503_v0 }
  0x36   : > { %1321 = vmatmul.mubr.msk.bf16.gmra.mxu1 %vm385_vm0, %v1428_v10  ;;  %v1429_v10 = vld [vmem:[%s1977_s1 + $0x40] sm:$0xff]  }
  0x37   : > { %783 = vmatprep.mubr.bf16.mxu1 %v1503_v0 }
  0x8a   : > { %v262_v17 = vpop.permute.xlu1 %261  ;;  %v258_v18 = vpop.permute.xlu0 %257 }
  0x8b   : > { %v268_v21 = vsel %vm267_vm1, %v258_v18, %v262_v17  ;;  %v270_v22 = vsel %vm267_vm1, %v262_v17, %v258_v18 }
  0x8c   : > { %v283_v27 = vmul.f32 %v276_v19, %v268_v21  ;;  %v284_v29 = vmul.f32 %v280_v20, %v270_v22 }
  0x8e   : > { %v264_v23 = vpop.permute.xlu1 %263  ;;  %v260_v24 = vpop.permute.xlu0 %259 }
  0x8f   : > { %v269_v25 = vsel %vm267_vm1, %v260_v24, %v264_v23  ;;  %v271_v26 = vsel %vm267_vm1, %v264_v23, %v260_v24 }
  0x90   : > { %v285_v28 = vmul.f32 %v276_v19, %v269_v25  ;;  %v286_v30 = vmul.f32 %v280_v20, %v271_v26 }
  0x92   : > { %v290_v32 = vpop.permute.xlu1 %289  ;;  %v288_v33 = vpop.permute.xlu0 %287  ;;  %v364_v34 = vpack.c.bf16 %v286_v30, %v284_v29  ;;  %v363_v35 = vpack.c.bf16 %v285_v28, %v283_v27 }
  0x94   : > { %412 = vmatprep.subr.bf16.mxu0 %v364_v34 }
  0x95   : > { %413 = vmatpush1.bf16.msra.mxu0 %v363_v35 }
  0x96   : > { %v294_v39 = vpop.permute.xlu1 %293  ;;  %v292_v40 = vpop.permute.xlu0 %291 }
  0x97   : > { %v297_v42 = vsel %vm295_vm2, %v290_v32, %v294_v39  ;;  %v299_v43 = vsel %vm295_vm2, %v294_v39, %v290_v32  ;;  %v296_v44 = vsel %vm295_vm2, %v288_v33, %v292_v40  ;;  %v298_v45 = vsel %vm295_vm2, %v292_v40, %v288_v33 }
  0x98   : > { %v313_v46 = vmul.f32 %v304_v36, %v297_v42  ;;  %v314_v47 = vmul.f32 %v308_v37, %v299_v43  ;;  %v311_v48 = vmul.f32 %v304_v36, %v296_v44  ;;  %v312_v49 = vmul.f32 %v308_v37, %v298_v45  ;;  %1310 = vmatmul.mubr.msk.bf16.vlgmr.msra.gmra.mxu0 %vm385_vm0, %v1421_v38 }
  0x99   : > { %440 = vmatprep.mubr.bf16.mxu0 %v1503_v0 }
  0x9a   : > { %v585_v50 = vpack.c.bf16 %v313_v46, %v311_v48  ;;  %v318_v51 = vpop.permute.xlu1 %317  ;;  %v316_v52 = vpop.permute.xlu0 %315  ;;  %v586_v53 = vpack.c.bf16 %v314_v47, %v312_v49 }
  0x9c   : > { %633 = vmatprep.subr.bf16.mxu0 %v586_v53 }
  0x9d   : > { %634 = vmatpush1.bf16.msra.mxu0 %v585_v50 }
  0x9e   : > { %v322_v57 = vpop.permute.xlu1 %321  ;;  %v320_v58 = vpop.permute.xlu0 %319 }
  0x9f   : > { %v325_v59 = vsel %vm323_vm3, %v318_v51, %v322_v57  ;;  %v327_v60 = vsel %vm323_vm3, %v322_v57, %v318_v51  ;;  %v324_v61 = vsel %vm323_vm3, %v316_v52, %v320_v58  ;;  %v326_v62 = vsel %vm323_vm3, %v320_v58, %v316_v52 }
  0xa0   : > { %v342_v63 = vmul.f32 %v333_v54, %v325_v59  ;;  %v343_v1 = vmul.f32 %v337_v55, %v327_v60  ;;  %v340_v2 = vmul.f32 %v333_v54, %v324_v61  ;;  %v341_v3 = vmul.f32 %v337_v55, %v326_v62  ;;  %1311 = vmatmul.mubr.msk.bf16.gmra.mxu0 %vm385_vm0, %v1423_v56 }
  0xa1   : > { %450 = vmatprep.mubr.bf16.mxu0 %v1503_v0 }
  0xa2   : > { %v717_v4 = vpack.c.bf16 %v342_v63, %v340_v2  ;;  %v718_v5 = vpack.c.bf16 %v343_v1, %v341_v3 }
  0xa4   : > { %765 = vmatprep.subr.bf16.mxu1 %v718_v5 }
  0xa5   : > { %766 = vmatpush1.bf16.msra.mxu1 %v717_v4 }
  0xa8   : > { %1312 = vmatmul.mubr.msk.bf16.gmra.mxu0 %vm385_vm0, %v1425_v6  ;;  %1350 = vmatmul.mubr.msk.bf16.vlgmr.msra.gmra.mxu1 %vm385_vm0, %v1430_v7 }
  0xa9   : > { %460 = vmatprep.mubr.bf16.mxu0 %v1503_v0  ;;  %793 = vmatprep.mubr.bf16.mxu1 %v1503_v0 }
  0xb0   : > { %1313 = vmatmul.mubr.msk.bf16.gmra.mxu0 %vm385_vm0, %v1427_v8  ;;  %1351 = vmatmul.mubr.msk.bf16.gmra.mxu1 %vm385_vm0, %v1432_v9 }
  0xb1   : > { %651 = vmatprep.mubr.bf16.mxu0 %v1503_v0  ;;  %803 = vmatprep.mubr.bf16.mxu1 %v1503_v0 }
  0xb8   : > { %1334 = vmatmul.mubr.msk.bf16.vlgmr.msra.gmra.mxu0 %vm385_vm0, %v1429_v10  ;;  %1352 = vmatmul.mubr.msk.bf16.gmra.mxu1 %vm385_vm0, %v1434_v11 }
  0xb9   : > { %661 = vmatprep.mubr.bf16.mxu0 %v1503_v0  ;;  %813 = vmatprep.mubr.bf16.mxu1 %v1503_v0 }
  0xc0   : > { %1335 = vmatmul.mubr.msk.bf16.gmra.mxu0 %vm385_vm0, %v1431_v12  ;;  %1353 = vmatmul.mubr.msk.bf16.gmra.mxu1 %vm385_vm0, %v1436_v13 }
  0xc1   : > { %671 = vmatprep.mubr.bf16.mxu0 %v1503_v0 }
  0xc8   : > { %1336 = vmatmul.mubr.msk.bf16.gmra.mxu0 %vm385_vm0, %v1433_v14 }
  0xc9   : > { %681 = vmatprep.mubr.bf16.mxu0 %v1503_v0 }
  0xd0   : > { %1337 = vmatmul.mubr.msk.bf16.gmra.mxu0 %vm385_vm0, %v1435_v15 }
  0xde   : > { %v537_v16 = vpop.f32.mrf.mxu1 }
  0xe0   : > { %v539_v17 = vpop.f32.mrf.mxu1 }
  0xe2   : > { %v541_v18 = vpop.f32.mrf.mxu1 }
  0xe4   : > { %v543_v19 = vpop.f32.mrf.mxu1 }
  0xe6   : > { %v547_v20 = vpop.f32.mrf.mxu1 }
  0xe8   : > { %v549_v21 = vpop.f32.mrf.mxu1 }
  0xea   : > { %v551_v22 = vpop.f32.mrf.mxu1 }
  0xec   : > { %v1687_v23 = vpop.f32.mrf.mxu1 }
  0xee   : > { %v1689_v24 = vpop.f32.mrf.mxu1 }
  0xf0   : > { %v1691_v25 = vpop.f32.mrf.mxu1 }
  0xf2   : > { %v1693_v0 = vpop.f32.mrf.mxu1 }
  0xf4   : > { %v1695_v26 = vpop.f32.mrf.mxu1 }
  0xf6   : > { %v1697_v28 = vpop.f32.mrf.mxu1 }
  0xf8   : > { %v1699_v31 = vpop.f32.mrf.mxu1 }
  0xfa   : > { %v1701_v34 = vpop.f32.mrf.mxu1 }
  0xfc   : > { %v1703_v37 = vpop.f32.mrf.mxu1 }
 0x158   : > { %v432_v27 = vpop.f32.mrf.mxu0 }
 0x159   : > { %v538_v54 = vadd.f32 %v537_v16, %v432_v27 }
 0x15a   : > { %v434_v29 = vpop.f32.mrf.mxu0 }
 0x15b   : > { %v540_v57 = vadd.f32 %v539_v17, %v434_v29 }
 0x15c   : > { %v436_v30 = vpop.f32.mrf.mxu0 }
 0x15d   : > { %v542_v61 = vadd.f32 %v541_v18, %v436_v30 }
 0x15e   : > { %v438_v32 = vpop.f32.mrf.mxu0 }
 0x15f   : > { %v544_v1 = vadd.f32 %v543_v19, %v438_v32 }
 0x160   : > { %v442_v33 = vpop.f32.mrf.mxu0 }
 0x161   : > { %v548_v7 = vadd.f32 %v547_v20, %v442_v33 }
 0x162   : > { %v444_v35 = vpop.f32.mrf.mxu0 }
 0x163   : > { %v550_v13 = vadd.f32 %v549_v21, %v444_v35 }
 0x164   : > { %v446_v36 = vpop.f32.mrf.mxu0 }
 0x165   : > { %v552_v17 = vadd.f32 %v551_v22, %v446_v36 }
 0x166   : > { %v448_v38 = vpop.f32.mrf.mxu0 }
 0x167   : > { %v554_v21 = vadd.f32 %v1687_v23, %v448_v38 }
 0x168   : > { %v452_v39 = vpop.f32.mrf.mxu0  ;;  %v785_v40 = vpop.f32.mrf.mxu1 }
 0x169   : > { %v558_v36 = vadd.f32 %v1689_v24, %v452_v39 }
 0x16a   : > { %v454_v41 = vpop.f32.mrf.mxu0  ;;  %v787_v42 = vpop.f32.mrf.mxu1 }
 0x16c   : > { %v1705_v43 = vpop.f32.mrf.mxu0  ;;  %v789_v44 = vpop.f32.mrf.mxu1 }
 0x16d   : > { %v562_v39 = vadd.f32 %v1693_v0, %v1705_v43 }
 0x16e   : > { %v1707_v45 = vpop.f32.mrf.mxu0  ;;  %v791_v46 = vpop.f32.mrf.mxu1 }
 0x170   : > { %v1709_v47 = vpop.f32.mrf.mxu0  ;;  %v795_v48 = vpop.f32.mrf.mxu1 }
 0x172   : > { %v1711_v49 = vpop.f32.mrf.mxu0  ;;  %v797_v50 = vpop.f32.mrf.mxu1 }
 0x174   : > { %v1713_v51 = vpop.f32.mrf.mxu0  ;;  %v799_v52 = vpop.f32.mrf.mxu1 }
 0x176   : > { %v1715_v53 = vpop.f32.mrf.mxu0  ;;  %v801_v56 = vpop.f32.mrf.mxu1 }
 0x178   : > { %v653_v55 = vpop.f32.mrf.mxu0  ;;  %v805_v60 = vpop.f32.mrf.mxu1 }
 0x179   : > { %v692_v58 = vadd.f32 %v653_v55, %v538_v54 }
 0x17a   : > { %v655_v59 = vpop.f32.mrf.mxu0  ;;  %v807_v6 = vpop.f32.mrf.mxu1 }
 0x17b   : > { %v693_v62 = vadd.f32 %v655_v59, %v540_v57  ;;  %v1717_v2 = vadd.f32 %v785_v40, %v692_v58 }
 0x17c   : > { %v657_v63 = vpop.f32.mrf.mxu0  ;;  %v809_v19 = vpop.f32.mrf.mxu1 }
 0x17d   : > { %v694_v3 = vadd.f32 %v657_v63, %v542_v61  ;;  %v1719_v4 = vadd.f32 %v787_v42, %v693_v62  ;;  %v880_v16 = vmul.f32 %v1717_v2, %v1717_v2 }
 0x17e   : > { %v659_v5 = vpop.f32.mrf.mxu0 }
 0x17f   : > { %v695_v8 = vadd.f32 %v659_v5, %v544_v1  ;;  %v856_v9 = vadd.f32 %v1719_v4, %v1717_v2  ;;  %v881_v10 = vmul.f32 %v1719_v4, %v1719_v4  ;;  %v1725_v11 = vadd.f32 %v789_v44, %v694_v3  ;;  %v811_v44 = vpop.f32.mrf.mxu1 }
 0x180   : > { %v663_v12 = vpop.f32.mrf.mxu0  ;;  %v568_v5 = vadd.f32 %v1697_v28, %v1709_v47 }
 0x181   : > { %v696_v14 = vadd.f32 %v663_v12, %v548_v7  ;;  %v1727_v15 = vadd.f32 %v791_v46, %v695_v8  ;;  %857 = vadd.xlane.f32.xlu0 %v856_v9  ;;  %v896_v29 = vadd.f32 %v881_v10, %v880_v16  ;;  %v882_v33 = vmul.f32 %v1725_v11, %v1725_v11  ;;  %v815_v61 = vpop.f32.mrf.mxu1 }
 0x182   : > { %v665_v18 = vpop.f32.mrf.mxu0 }
 0x183   : > { %v697_v20 = vadd.f32 %v665_v18, %v550_v13  ;;  %v859_v27 = vadd.f32 %v1727_v15, %v1725_v11  ;;  %v883_v30 = vmul.f32 %v1727_v15, %v1727_v15  ;;  %v1738_v35 = vadd.f32 %v795_v48, %v696_v14  ;;  %v817_v9 = vpop.f32.mrf.mxu1 }
 0x184   : > { %v667_v32 = vpop.f32.mrf.mxu0  ;;  %v560_v48 = vadd.f32 %v1691_v25, %v454_v41 }
 0x185   : > { %v698_v40 = vadd.f32 %v667_v32, %v552_v17  ;;  %v1740_v22 = vadd.f32 %v797_v50, %v697_v20  ;;  %860 = vadd.xlane.f32.xlu1 %v859_v27  ;;  %897 = vadd.xlane.f32.xlu0 %v896_v29  ;;  %v899_v54 = vadd.f32 %v883_v30, %v882_v33  ;;  %v819_v16 = vpop.f32.mrf.mxu1 }
 0x186   : > { %v669_v42 = vpop.f32.mrf.mxu0  ;;  %v884_v24 = vmul.f32 %v1738_v35, %v1738_v35  ;;  %v574_v27 = vadd.f32 %v1703_v37, %v1715_v53 }
 0x187   : > { %v699_v46 = vadd.f32 %v669_v42, %v554_v21  ;;  %v862_v23 = vadd.f32 %v1740_v22, %v1738_v35  ;;  %v885_v38 = vmul.f32 %v1740_v22, %v1740_v22  ;;  %v1748_v55 = vadd.f32 %v799_v52, %v698_v40  ;;  %v821_v33 = vpop.f32.mrf.mxu1 }
 0x188   : > { %v673_v50 = vpop.f32.mrf.mxu0  ;;  %v564_v52 = vadd.f32 %v1695_v26, %v1707_v45 }
 0x189   : > { %v700_v57 = vadd.f32 %v673_v50, %v558_v36  ;;  %v1750_v58 = vadd.f32 %v801_v56, %v699_v46  ;;  %900 = vadd.xlane.f32.xlu1 %v899_v54  ;;  %863 = vadd.xlane.f32.xlu0 %v862_v23  ;;  %v902_v63 = vadd.f32 %v885_v38, %v884_v24 }
 0x18a   : > { %v675_v59 = vpop.f32.mrf.mxu0  ;;  %v886_v1 = vmul.f32 %v1748_v55, %v1748_v55 }
 0x18b   : > { %v701_v62 = vadd.f32 %v675_v59, %v560_v48  ;;  %v865_v25 = vadd.f32 %v1750_v58, %v1748_v55  ;;  %v887_v41 = vmul.f32 %v1750_v58, %v1750_v58  ;;  %v1764_v3 = vadd.f32 %v805_v60, %v700_v57 }
 0x18c   : > { %v677_v56 = vpop.f32.mrf.mxu0  ;;  %v570_v60 = vadd.f32 %v1699_v31, %v1711_v49  ;;  %v572_v31 = vadd.f32 %v1701_v34, %v1713_v51 }
 0x18d   : > { %v702_v0 = vadd.f32 %v677_v56, %v562_v39  ;;  %v1766_v43 = vadd.f32 %v807_v6, %v701_v62  ;;  %903 = vadd.xlane.f32.xlu1 %v902_v63  ;;  %866 = vadd.xlane.f32.xlu0 %v865_v25  ;;  %v905_v8 = vadd.f32 %v887_v41, %v886_v1 }
 0x18e   : > { %v679_v7 = vpop.f32.mrf.mxu0  ;;  %v888_v28 = vmul.f32 %v1764_v3, %v1764_v3 }
 0x18f   : > { %v703_v10 = vadd.f32 %v679_v7, %v564_v52  ;;  %v1770_v12 = vadd.f32 %v809_v19, %v702_v0  ;;  %v868_v26 = vadd.f32 %v1766_v43, %v1764_v3  ;;  %v889_v45 = vmul.f32 %v1766_v43, %v1766_v43 }
 0x190   : > { %v683_v6 = vpop.f32.mrf.mxu0 }
 0x191   : > { %v704_v13 = vadd.f32 %v683_v6, %v568_v5  ;;  %v1778_v14 = vadd.f32 %v811_v44, %v703_v10  ;;  %869 = vadd.xlane.f32.xlu1 %v868_v26  ;;  %906 = vadd.xlane.f32.xlu0 %v905_v8  ;;  %v908_v18 = vadd.f32 %v889_v45, %v888_v28 }
 0x192   : > { %v685_v47 = vpop.f32.mrf.mxu0  ;;  %v890_v19 = vmul.f32 %v1770_v12, %v1770_v12 }
 0x193   : > { %v705_v17 = vadd.f32 %v685_v47, %v570_v60  ;;  %v891_v20 = vmul.f32 %v1778_v14, %v1778_v14  ;;  %v1790_v29 = vadd.f32 %v815_v61, %v704_v13  ;;  %v871_v42 = vadd.f32 %v1778_v14, %v1770_v12 }
 0x194   : > { %v687_v49 = vpop.f32.mrf.mxu0 }
 0x195   : > { %v1792_v30 = vadd.f32 %v817_v9, %v705_v17  ;;  %909 = vadd.xlane.f32.xlu0 %v908_v18  ;;  %v911_v21 = vadd.f32 %v891_v20, %v890_v19  ;;  %v706_v40 = vadd.f32 %v687_v49, %v572_v31  ;;  %v892_v53 = vmul.f32 %v1790_v29, %v1790_v29 }
 0x196   : > { %v689_v32 = vpop.f32.mrf.mxu0 }
 0x197   : > { %v707_v36 = vadd.f32 %v689_v32, %v574_v27  ;;  %912 = vadd.xlane.f32.xlu1 %v911_v21  ;;  %v893_v34 = vmul.f32 %v1792_v30, %v1792_v30  ;;  %v874_v37 = vadd.f32 %v1792_v30, %v1790_v29  ;;  %v1804_v44 = vadd.f32 %v819_v16, %v706_v40 }
 0x199   : > { %v1798_v51 = vadd.f32 %v821_v33, %v707_v36  ;;  %872 = vadd.xlane.f32.xlu0 %v871_v42  ;;  %v914_v46 = vadd.f32 %v893_v34, %v892_v53  ;;  %v894_v10 = vmul.f32 %v1804_v44, %v1804_v44 }
 0x19b   : > { %875 = vadd.xlane.f32.xlu1 %v874_v37  ;;  %v877_v54 = vadd.f32 %v1798_v51, %v1804_v44  ;;  %v895_v7 = vmul.f32 %v1798_v51, %v1798_v51 }
 0x19d   : > { %915 = vadd.xlane.f32.xlu0 %v914_v46  ;;  %v917_v60 = vadd.f32 %v895_v7, %v894_v10 }
 0x19f   : > { %878 = vadd.xlane.f32.xlu1 %v877_v54 }
 0x20a   : > { %v858_v23 = vpop.xlane.xlu0 %857 }
 0x20b   : > { %v921_v39 = vsel %vm920_vm4, %v858_v23, 0.0 }
 0x20e   : > { %v861_v38 = vpop.xlane.xlu1 %860  ;;  %v898_v48 = vpop.xlane.xlu0 %897 }
 0x20f   : > { %v922_v50 = vsel %vm920_vm4, %v861_v38, 0.0  ;;  %v937_v52 = vsel %vm920_vm4, %v898_v48, 0.0 }
 0x210   : > { %v923_v61 = vadd.f32 %v922_v50, %v921_v39 }
 0x212   : > { %v901_v57 = vpop.xlane.xlu1 %900  ;;  %v864_v24 = vpop.xlane.xlu0 %863 }
 0x213   : > { %v924_v59 = vsel %vm920_vm4, %v864_v24, 0.0  ;;  %v938_v62 = vsel %vm920_vm4, %v901_v57, 0.0 }
 0x214   : > { %v925_v63 = vadd.f32 %v924_v59, %v923_v61  ;;  %v939_v0 = vadd.f32 %v938_v62, %v937_v52 }
 0x216   : > { %v904_v25 = vpop.xlane.xlu1 %903  ;;  %v867_v41 = vpop.xlane.xlu0 %866 }
 0x217   : > { %v940_v56 = vsel %vm920_vm4, %v904_v25, 0.0  ;;  %v926_v1 = vsel %vm920_vm4, %v867_v41, 0.0 }
 0x218   : > { %v927_v5 = vadd.f32 %v926_v1, %v925_v63  ;;  %v941_v8 = vadd.f32 %v940_v56, %v939_v0 }
 0x21a   : > { %928 = vadd.xlane.f32.xlu0 %v927_v5  ;;  %v907_v9 = vpop.xlane.xlu0 %906  ;;  %v870_v45 = vpop.xlane.xlu1 %869 }
 0x21b   : > { %v942_v26 = vsel %vm920_vm4, %v907_v9, 0.0  ;;  %v1068_v19 = vsel %vm920_vm4, %v870_v45, 0.0  ;;  %v967_v45 = vld [vmem:[%s1980_s4 + $0x8] sm:$0xff] }
 0x21c   : > { %v943_v6 = vadd.f32 %v942_v26, %v941_v8  ;;  %v966_v26 = vld [vmem:[%s1980_s4] sm:$0xff] }
 0x21e   : > { %918 = vadd.xlane.f32.xlu0 %v917_v60  ;;  %944 = vadd.xlane.f32.xlu1 %v943_v6  ;;  %v910_v13 = vpop.xlane.xlu0 %909 }
 0x21f   : > { %v1084_v47 = vsel %vm920_vm4, %v910_v13, 0.0 }
 0x220   : > { %v913_v28 = vpop.xlane.xlu1 %912 }
 0x221   : > { %v1085_v16 = vsel %vm920_vm4, %v913_v28, 0.0  ;;  %v968_v28 = vld [vmem:[%s1980_s4 + $0x10] sm:$0xff] }
 0x222   : > { %v1086_v17 = vadd.f32 %v1085_v16, %v1084_v47  ;;  %v873_v18 = vpop.xlane.xlu0 %872 }
 0x223   : > { %v1069_v20 = vsel %vm920_vm4, %v873_v18, 0.0 }
 0x224   : > { %v1070_v31 = vadd.f32 %v1069_v20, %v1068_v19  ;;  %v876_v49 = vpop.xlane.xlu1 %875 }
 0x225   : > { %v1071_v27 = vsel %vm920_vm4, %v876_v49, 0.0 }
 0x226   : > { %v1072_v21 = vadd.f32 %v1071_v27, %v1070_v31  ;;  %v916_v36 = vpop.xlane.xlu0 %915  ;;  %v975_v27 = vld [vmem:[%s1981_s5] sm:$0xff] }
 0x227   : > { %v1087_v34 = vsel %vm920_vm4, %v916_v36, 0.0  ;;  %v976_v36 = vld [vmem:[%s1981_s5 + $0x8] sm:$0xff] }
 0x228   : > { %v879_v32 = vpop.xlane.xlu1 %878  ;;  %v1088_v46 = vadd.f32 %v1087_v34, %v1086_v17  ;;  %v969_v17 = vld [vmem:[%s1980_s4 + $0x18] sm:$0xff] }
 0x229   : > { %v1073_v33 = vsel %vm920_vm4, %v879_v32, 0.0 }
 0x22a   : > { %v1074_v40 = vadd.f32 %v1073_v33, %v1072_v21 }
 0x22c   : > { %1075 = vadd.xlane.f32.xlu1 %v1074_v40 }
 0x2a3   : > { %v929_v42 = vpop.xlane.xlu0 %928 }
 0x2a4   : > { %v930_v37 = vrot.slane %v929_v42, 4 }
 0x2a6   : > { %v931_v53 = vadd.f32 %v930_v37, %v929_v42 }
 0x2a7   : > { %v945_v54 = vpop.xlane.xlu1 %944  ;;  %v919_v23 = vpop.xlane.xlu0 %918 }
 0x2a8   : > { %v932_v38 = vrot.slane %v931_v53, 2  ;;  %v946_v48 = vrot.slane %v945_v54, 4  ;;  %v1089_v50 = vsel %vm920_vm4, %v919_v23, 0.0 }
 0x2a9   : > { %v1090_v57 = vadd.f32 %v1089_v50, %v1088_v46  ;;  %v977_v46 = vld [vmem:[%s1981_s5 + $0x10] sm:$0xff] }
 0x2aa   : > { %v947_v24 = vadd.f32 %v946_v48, %v945_v54  ;;  %v933_v39 = vadd.f32 %v932_v38, %v931_v53  ;;  %v978_v38 = vld [vmem:[%s1981_s5 + $0x18] sm:$0xff] }
 0x2ab   : > { %1091 = vadd.xlane.f32.xlu0 %v1090_v57 }
 0x2ac   : > { %v948_v59 = vrot.slane %v947_v24, 2  ;;  %v934_v61 = vrot.slane %v933_v39, 1 }
 0x2ae   : > { %v935_v62 = vadd.f32 %v934_v61, %v933_v39  ;;  %v949_v63 = vadd.f32 %v948_v59, %v947_v24 }
 0x2b0   : > { %1361 = vpush %v935_v62  ;;  %v950_v25 = vrot.slane %v949_v63, 1 }
 0x2b2   : > { %v951_v41 = vadd.f32 %v950_v25, %v949_v63 }
 0x2b4   : > { %1363 = vpush %v951_v41 }
 0x2b5   : > { %v1076_v52 = vpop.xlane.xlu1 %1075 }
 0x2b6   : > { %v1077_v56 = vrot.slane %v1076_v52, 4 }
 0x2b8   : > { %v1078_v1 = vadd.f32 %v1077_v56, %v1076_v52  ;;  %v1113_v56 = vld [vmem:[%s1980_s4 + $0x20] sm:$0xff] }
 0x2ba   : > { %v1079_v5 = vrot.slane %v1078_v1, 2 }
 0x2bc   : > { %v1080_v7 = vadd.f32 %v1079_v5, %v1078_v1  ;;  %v1115_v1 = vld [vmem:[%s1980_s4 + $0x30] sm:$0xff] }
 0x2be   : > { %v1081_v8 = vrot.slane %v1080_v7, 1 }
 0x2c0   : > { %v1082_v10 = vadd.f32 %v1081_v8, %v1080_v7 }
 0x2e1   : > { %s1362_s29 = spop %1361 }
 0x2e2   : > { %s1828_s9 = smul.f32 0.00012207031, %s1362_s29 }
 0x2e4   : > { %s959_s10 = smul.f32 %s1828_s9, %s1828_s9  ;;  %v979_v19 = vstv %s1828_s9 }
 0x2e5   : > { %s1364_s11 = spop %1363 }
 0x2e6   : > { %s958_s12 = smul.f32 0.00012207031, %s1364_s11 }
 0x2e8   : > { %s960_s13 = ssub.f32 %s958_s12, %s959_s10 }
 0x2ea   : > { %s961_s15 = smax.f32 %s1507_s14, %s960_s13 }
 0x2eb   : > { %s962_s16 = sadd.f32 1e-05, %s961_s15  ;;  %s242_s15 = sand.u32 1, %s1493_s22  }
 0x2ec   : > { %s1936_s25 = scalar_lea.sflag [#allocation4], %s242_s15 }
 0x2ed   : > { %v963_v0 = vstv %s962_s16  ;;  %s1295_s16 = sshll.u32 %s242_s15, 7 }
 0x2ee   : > { %1437 = vrsqrt.f32 %v963_v0 }
 0x2fb   : > { %v1438_v9 = vpop.eup %1437 }
 0x2fc   : > { %1365 = vpush %v1438_v9 }
 0x2fd   : > { %1367 = vpush %v1082_v10 }
 0x32d   : > { %s1366_s26 = spop %1365 }
 0x32e   : > { %v970_v60 = vstv %s1366_s26  ;;  %s1368_s20 = spop %1367 }
 0x32f   : > { %v971_v6 = vmul.f32 %v970_v60, %v966_v26  ;;  %v972_v13 = vmul.f32 %v970_v60, %v967_v45  ;;  %v973_v47 = vmul.f32 %v970_v60, %v968_v28  ;;  %v974_v31 = vmul.f32 %v970_v60, %v969_v17  ;;  %s1858_s26 = smul.f32 0.00012207031, %s1368_s20 }
 0x331   : > { %998 = vperm.xlu1 %1419, %v971_v6   ;;  %1003 = vperm.xlu0 %1420, %v972_v13   ;;  %v980_v49 = vmul.f32 %v979_v19, %v971_v6  ;;  %v981_v33 = vmul.f32 %v979_v19, %v972_v13  ;;  %v982_v53 = vmul.f32 %v979_v19, %v973_v47  ;;  %s1106_s28 = smul.f32 %s1858_s26, %s1858_s26  ;;  %v1126_v60 = vstv %s1858_s26  ;;  %v1114_v13 = vld [vmem:[%s1980_s4 + $0x28] sm:$0xff] }
 0x332   : > { %v983_v23 = vmul.f32 %v979_v19, %v974_v31 }
 0x333   : > { %v984_v32 = vsub.f32 %v975_v27, %v980_v49  ;;  %v985_v34 = vsub.f32 %v976_v36, %v981_v33  ;;  %v986_v54 = vsub.f32 %v977_v46, %v982_v53  ;;  %v1123_v46 = vld [vmem:[%s1981_s5 + $0x28] sm:$0xff] }
 0x334   : > { %v1092_v16 = vpop.xlane.xlu0 %1091  ;;  %v987_v48 = vsub.f32 %v978_v38, %v983_v23  ;;  %v1125_v38 = vld [vmem:[%s1981_s5 + $0x38] sm:$0xff] }
 0x335   : > { %v1093_v18 = vrot.slane %v1092_v16, 4  ;;  %1008 = vperm.xlu1 %1419, %v973_v47  }
 0x337   : > { %v1094_v20 = vadd.f32 %v1093_v18, %v1092_v16 }
 0x339   : > { %v1095_v21 = vrot.slane %v1094_v20, 2  ;;  %1013 = vperm.xlu1 %1419, %v974_v31  }
 0x33b   : > { %v1096_v40 = vadd.f32 %v1095_v21, %v1094_v20 }
 0x33d   : > { %1026 = vperm.xlu1 %1419, %v984_v32   ;;  %v1097_v42 = vrot.slane %v1096_v40, 1  ;;  %v1124_v32 = vld [vmem:[%s1981_s5 + $0x30] sm:$0xff] }
 0x33f   : > { %v1098_v37 = vadd.f32 %v1097_v42, %v1096_v40 }
 0x341   : > { %1031 = vperm.xlu1 %1419, %v985_v34   ;;  %1369 = vpush %v1098_v37 }
 0x345   : > { %1036 = vperm.xlu1 %1419, %v986_v54  }
 0x349   : > { %1041 = vperm.xlu1 %1419, %v987_v48  }
 0x372   : > { %s1370_s29 = spop %1369 }
 0x373   : > { %s1105_s10 = smul.f32 0.00012207031, %s1370_s29  ;;  %s1880_s29 = scalar_lea.vmem [#allocation3], %s1295_s16 }
 0x374   : > { %s1229_s20 = sshll.u32 %s1880_s29, 4  ;;  %s1930_s20 = int_to_ptr.vmem [resolvable:$true] %s1229_s20 }
 0x375   : > { %s1107_s11 = ssub.f32 %s1105_s10, %s1106_s28 }
 0x377   : > { %s1108_s12 = smax.f32 %s1507_s14, %s1107_s11  ;;  %s1928_s11 = scalar_lea.hbm %s1982_s6, %s1360_s19 }
 0x378   : > { %s1109_s13 = sadd.f32 1e-05, %s1108_s12  ;;  %s1441_s12 = scalar_lea.vmem %s1930_s20, 2048 }
 0x379   : > { %p1442_p11 = scmp.ne.s32.totalorder %s1930_s20, %s1441_s12 }
 0x37a   : > { %v1110_v50 = vstv %s1109_s13  ;;  %s1508_s13 = smov [#allocation3]  }
 0x37b   : > { %1439 = vrsqrt.f32 %v1110_v50  ;;  %p1443_p12 = pnand %p1442_p11, %p1584_p5  ;;  %s1445_s26 = sshll.u32 %s1508_s13, 4  ;;  %s1446_s26 = int_to_ptr.vmem [resolvable:$false] %s1445_s26 }
 0x37c   : > { %s1447_s16 = scalar_lea.vmem %s1446_s26, 4096  ;;  %p1448_p0 = scmp.lt.s32.totalorder %s1930_s20, %s1446_s26 }
 0x37d   : > { %p1444_p13 = pneg %p1443_p12  ;;  %p1449_p1 = scmp.lt.s32.totalorder %s1447_s16, %s1441_s12 }
 0x37f   : > { %p1450_p2 = por %p1449_p1, %p1448_p0 }
 0x381   : > { %p1451_p3 = pnand %p1450_p2, %p1444_p13 }
 0x388   : > { %v1440_v57 = vpop.eup %1439 }
 0x389   : > { %1371 = vpush %v1440_v57 }
 0x3ac   : > { %v999_v24 = vpop.permute.xlu1 %998  ;;  %v1004_v63 = vpop.permute.xlu0 %1003 }
 0x3ad   : > { %v1016_v61 = vmul.f32 %v999_v24, %v1717_v2  ;;  %v1017_v62 = vmul.f32 %v999_v24, %v1719_v4  ;;  %v1116_v2 = vld [vmem:[%s1980_s4 + $0x38] sm:$0xff]  ;;  %v1018_v4 = vmul.f32 %v1004_v63, %v1725_v11  ;;  %v1019_v0 = vmul.f32 %v1004_v63, %v1727_v15  ;;  %v1122_v15 = vld [vmem:[%s1981_s5 + $0x20] sm:$0xff] }
 0x3b0   : > { %v1009_v39 = vpop.permute.xlu1 %1008 }
 0x3b1   : > { %v1020_v47 = vmul.f32 %v1009_v39, %v1738_v35  ;;  %v1021_v16 = vmul.f32 %v1009_v39, %v1740_v22 }
 0x3b4   : > { %v1014_v59 = vpop.permute.xlu1 %1013 }
 0x3b5   : > { %v1022_v35 = vmul.f32 %v1014_v59, %v1748_v55  ;;  %v1023_v22 = vmul.f32 %v1014_v59, %v1750_v58 }
 0x3b8   : > { %v1027_v25 = vpop.permute.xlu1 %1026 }
 0x3b9   : > { %v1044_v41 = vadd.f32 %v1027_v25, %v1016_v61  ;;  %v1045_v52 = vadd.f32 %v1027_v25, %v1017_v62 }
 0x3ba   : > { %s1372_s28 = spop %1371 }
 0x3bb   : > { %v1052_v5 = vmax.f32 %v1044_v41, 0.0  ;;  %v1053_v7 = vmax.f32 %v1045_v52, 0.0  ;;  %v1117_v8 = vstv %s1372_s28 }
 0x3bc   : > { %v1118_v9 = vmul.f32 %v1117_v8, %v1113_v56  ;;  %v1120_v10 = vmul.f32 %v1117_v8, %v1115_v1  ;;  %v1121_v26 = vmul.f32 %v1117_v8, %v1116_v2  ;;  %v1032_v45 = vpop.permute.xlu1 %1031  ;;  %v1119_v49 = vmul.f32 %v1117_v8, %v1114_v13 }
 0x3bd   : > { %1060 = vst [vmem:[%s1880_s29] sm:$0xff] %v1052_v5  ;;  %1061 = vst [vmem:[%s1880_s29 + $0x8] sm:$0xff] %v1053_v7  ;;  %v1046_v6 = vadd.f32 %v1032_v45, %v1018_v4  ;;  %v1047_v11 = vadd.f32 %v1032_v45, %v1019_v0 }
 0x3be   : > { %v1127_v28 = vmul.f32 %v1126_v60, %v1118_v9  ;;  %1160 = vperm.xlu0 %1420, %v1121_v26   ;;  %1145 = vperm.xlu1 %1419, %v1118_v9   ;;  %v1129_v19 = vmul.f32 %v1126_v60, %v1120_v10  ;;  %v1128_v34 = vmul.f32 %v1126_v60, %v1119_v49 }
 0x3bf   : > { %v1054_v17 = vmax.f32 %v1046_v6, 0.0  ;;  %v1055_v18 = vmax.f32 %v1047_v11, 0.0  ;;  %v1130_v58 = vmul.f32 %v1126_v60, %v1121_v26 }
 0x3c0   : > { %v1037_v20 = vpop.permute.xlu1 %1036  ;;  %v1131_v31 = vsub.f32 %v1122_v15, %v1127_v28  ;;  %v1133_v42 = vsub.f32 %v1124_v32, %v1129_v19  ;;  %v1132_v23 = vsub.f32 %v1123_v46, %v1128_v34 }
 0x3c1   : > { %1062 = vst [vmem:[%s1880_s29 + $0x10] sm:$0xff] %v1054_v17  ;;  %1063 = vst [vmem:[%s1880_s29 + $0x18] sm:$0xff] %v1055_v18  ;;  %v1048_v27 = vadd.f32 %v1037_v20, %v1020_v47  ;;  %v1049_v21 = vadd.f32 %v1037_v20, %v1021_v16  ;;  %v1134_v48 = vsub.f32 %v1125_v38, %v1130_v58 }
 0x3c2   : > { %1173 = vperm.xlu0 %1420, %v1131_v31   ;;  %1150 = vperm.xlu1 %1419, %v1119_v49  }
 0x3c3   : > { %v1056_v33 = vmax.f32 %v1048_v27, 0.0  ;;  %v1057_v40 = vmax.f32 %v1049_v21, 0.0 }
 0x3c4   : > { %v1042_v36 = vpop.permute.xlu1 %1041 }
 0x3c5   : > { %1064 = vst [vmem:[%s1880_s29 + $0x20] sm:$0xff] %v1056_v33  ;;  %1065 = vst [vmem:[%s1880_s29 + $0x28] sm:$0xff] %v1057_v40  ;;  %v1050_v37 = vadd.f32 %v1042_v36, %v1022_v35  ;;  %v1051_v53 = vadd.f32 %v1042_v36, %v1023_v22 }
 0x3c6   : > { %1183 = vperm.xlu0 %1420, %v1133_v42   ;;  %1155 = vperm.xlu1 %1419, %v1120_v10  }
 0x3c7   : > { %v1058_v55 = vmax.f32 %v1050_v37, 0.0  ;;  %v1059_v54 = vmax.f32 %v1051_v53, 0.0 }
 0x3c9   : > { %1066 = vst [vmem:[%s1880_s29 + $0x30] sm:$0xff] %v1058_v55  ;;  %1067 = vst [vmem:[%s1880_s29 + $0x38] sm:$0xff] %v1059_v54 }
 0x3ca   : > { %1178 = vperm.xlu1 %1419, %v1132_v23  }
 0x3ce   : > { %1188 = vperm.xlu1 %1419, %v1134_v48  }
 0x439   : > { %v1161_v50 = vpop.permute.xlu0 %1160  ;;  %v1146_v57 = vpop.permute.xlu1 %1145 }
 0x43a   : > { %v1163_v24 = vmul.f32 %v1146_v57, %v1764_v3  ;;  %v1164_v39 = vmul.f32 %v1146_v57, %v1766_v43 }
 0x43d   : > { %v1174_v59 = vpop.permute.xlu0 %1173  ;;  %v1151_v61 = vpop.permute.xlu1 %1150 }
 0x43e   : > { %v1191_v62 = vadd.f32 %v1174_v59, %v1163_v24  ;;  %v1192_v63 = vadd.f32 %v1174_v59, %v1164_v39  ;;  %v1165_v3 = vmul.f32 %v1151_v61, %v1770_v12  ;;  %v1166_v43 = vmul.f32 %v1151_v61, %v1778_v14 }
 0x440   : > { %v1199_v25 = vmax.f32 %v1191_v62, 0.0  ;;  %v1200_v41 = vmax.f32 %v1192_v63, 0.0 }
 0x441   : > { %v1156_v52 = vpop.permute.xlu1 %1155  ;;  %v1184_v2 = vpop.permute.xlu0 %1183 }
 0x442   : > { %1207 = vst [vmem:[%s1880_s29 + $0x40] sm:$0xff] %v1199_v25  ;;  %1208 = vst [vmem:[%s1880_s29 + $0x48] sm:$0xff] %v1200_v41  ;;  %v1167_v56 = vmul.f32 %v1156_v52, %v1790_v29  ;;  %v1168_v1 = vmul.f32 %v1156_v52, %v1792_v30  ;;  %v1169_v29 = vmul.f32 %v1161_v50, %v1804_v44 }
 0x443   : > { %v1170_v30 = vmul.f32 %v1161_v50, %v1798_v51 }
 0x444   : > { %v1195_v4 = vadd.f32 %v1184_v2, %v1167_v56  ;;  %v1196_v0 = vadd.f32 %v1184_v2, %v1168_v1 }
 0x445   : > { %v1179_v5 = vpop.permute.xlu1 %1178 }
 0x446   : > { %v1203_v7 = vmax.f32 %v1195_v4, 0.0  ;;  %v1204_v8 = vmax.f32 %v1196_v0, 0.0  ;;  %v1193_v9 = vadd.f32 %v1179_v5, %v1165_v3  ;;  %v1194_v10 = vadd.f32 %v1179_v5, %v1166_v43 }
 0x448   : > { %1211 = vst [vmem:[%s1880_s29 + $0x60] sm:$0xff] %v1203_v7  ;;  %1212 = vst [vmem:[%s1880_s29 + $0x68] sm:$0xff] %v1204_v8  ;;  %v1201_v12 = vmax.f32 %v1193_v9, 0.0  ;;  %v1202_v14 = vmax.f32 %v1194_v10, 0.0 }
 0x449   : > { %v1189_v26 = vpop.permute.xlu1 %1188 }
 0x44a   : > { %1209 = vst [vmem:[%s1880_s29 + $0x50] sm:$0xff] %v1201_v12  ;;  %1210 = vst [vmem:[%s1880_s29 + $0x58] sm:$0xff] %v1202_v14  ;;  %v1197_v45 = vadd.f32 %v1189_v26, %v1169_v29  ;;  %v1198_v60 = vadd.f32 %v1189_v26, %v1170_v30 }
 0x44c   : > { %v1205_v51 = vmax.f32 %v1197_v45, 0.0  ;;  %v1206_v44 = vmax.f32 %v1198_v60, 0.0 }
 0x44e   : > { %1213 = vst [vmem:[%s1880_s29 + $0x70] sm:$0xff] %v1205_v51  ;;  %1214 = vst [vmem:[%s1880_s29 + $0x78] sm:$0xff] %v1206_v44 }
 0x44f   : > { %1454 = shalt.err (!%p1451_p3)
}
 0x450   : > { %s1455_s15 = scalar_lea.hbm %s1928_s11, 2048  ;;  %s1459_s9 = scalar_lea.hbm %s1982_s6, 4096 }
 0x451   : > { %p1456_p4 = scmp.ne.s32.totalorder %s1928_s11, %s1455_s15  ;;  %p1460_p9 = scmp.lt.s32.totalorder %s1928_s11, %s1982_s6 }
 0x452   : > { %p1461_p10 = scmp.lt.s32.totalorder %s1459_s9, %s1455_s15 }
 0x453   : > { %p1457_p7 = pnand %p1456_p4, %p1584_p5 }
 0x454   : > { %p1462_p11 = por %p1461_p10, %p1460_p9 }
 0x455   : > { %p1458_p8 = pneg %p1457_p7 }
 0x457   : > { %p1463_p12 = pnand %p1462_p11, %p1458_p8 }
 0x459   : > { %1466 = shalt.err (!%p1463_p12)
}
 0x45a   : > { %s1509_s19 = smov 256   ;;  %s1510_s28 = smov 16  }
 0x45b   : > { %1373 = dma.vmem_to_hbm [thread:$0]  (%p1584_p5), %s1930_s20, 2048, %s1928_s11, %s1936_s25, %s1509_s19, %s1509_s19, %s1510_s28  }
 0x45c PF: > { %p1379_p13 = scmp.ge.s32.totalorder %s1501_s24, 2  ;;  %s1244_s10 = sand.u32 1, %s1489_s21  }
 0x45d   : > { %s1245_s12 = scalar_lea.sflag [#allocation4], %s1244_s10 }
 0x45e   : > { %p1376_p0 = pnand %p1379_p13, %p1588_p6 }
 0x460   : > { %p1377_p1 = pneg %p1376_p0 }
 0x462   : > { %1484 = dma.done.wait (%p1377_p1), %s1245_s12, 2048  }
 0x463   : > { %1486 = vsyncadd (%p1377_p1), %s1245_s12, 4294965248  ;;  %p16_p2 = scmp.ge.s32.totalorder %s1571_s27, 4   ;;  %s1985_s21 = smov %s1493_s22 }
 0x464   : > { %s1986_s22 = smov %s1497_s23  ;;  %s1987_s23 = smov %s1582_s30 }
 0x465   : > { %s1988_s24 = smov %s1571_s27  ;;  %18 = sbr.rel (!%p16_p2) target bundleno = 3 (0x3), region = 82 }
 0x46a   :  { %1250 = vsyncpa [#allocation4], 1 }
 0x46b   :  { %1252 = vsyncpa [#allocation4 + $0x1], 1 }

</bundles_post_ra>
